<compile_context>
chip_gen: v7x
topology: tpu7x:2x2x1
jax: 0.10.0
libtpu: 0.0.40
codegen_flags: <defaults>
</compile_context>

<pallas_src>
import functools

import numpy as np
import jax
import jax.numpy as jnp
from jax import lax
from jax.experimental import pallas as pl
from jax.experimental.pallas import tpu as pltpu

LANE = 128          # vreg lane width
SUBLANE_BF16 = 16   # bf16 packs 16 sublanes per vreg -> pad batch to 16


def _round_up(x, m):
    return ((x + m - 1) // m) * m


def _vmem_budget_bytes():
    """Generation-aware scoped-VMEM budget (~3/4 of physical VMEM, capped)."""
    cap = 64 * 1024 * 1024
    try:
        info = pltpu.get_tpu_info()
        cap = int(getattr(info, "vmem_capacity_bytes", cap))
    except Exception:
        pass
    return min(cap * 3 // 4, 112 * 1024 * 1024)


def _pick_tile(dim, preferred, align):
    """Full dim, or an `align`-multiple divisor of dim not exceeding `preferred`."""
    if dim <= preferred:
        return dim
    t = (preferred // align) * align
    while t >= align:
        if dim % t == 0:
            return t
        t -= align
    return dim


def _pick_chunk(T, Bp, Hp, dirs, budget, max_chunk=64):
    """Timesteps per GRU grid step, sized so the streamed (double-buffered)
    gi/out blocks plus grid-invariant operands fit in the VMEM budget."""
    per_t = dirs * (Bp * 3 * Hp + Bp * Hp) * 2 * 2            # bf16 gi + out, x2 buffers
    fixed = (2 * dirs * (Bp * Hp * 4 + Hp * 3 * Hp * 2 + Hp * 4)  # h0/whh/bhn, x2 buffers
             + dirs * Bp * Hp * 4)                                 # f32 h scratch
    avail = budget // 2 - fixed                                # keep ~half as headroom
    cmax = max(1, min(max_chunk, avail // max(per_t, 1)))
    c = int(max(1, min(T, cmax)))
    while T % c:
        c -= 1
    return c


# ----------------------------------------------------------------------------
# Tiled linear kernel: out = x @ w + b with bf16 MXU operands and an f32 VMEM
# accumulator over the K grid axis. Used for the hoisted GRU input projection
# (both directions at once) and for the classifier.
# ----------------------------------------------------------------------------
def _linear_kernel(x_ref, w_ref, b_ref, o_ref, acc_ref):
    k = pl.program_id(2)

    @pl.when(k == 0)
    def _():
        acc_ref[...] = jnp.zeros_like(acc_ref)

    acc_ref[...] += jnp.dot(x_ref[...], w_ref[...],
                            preferred_element_type=jnp.float32)

    @pl.when(k == pl.num_programs(2) - 1)
    def _():
        o_ref[...] = (acc_ref[...] + b_ref[...]).astype(o_ref.dtype)


def linear_pallas(x, w, b, *, out_dtype=jnp.float32, budget=None):
    budget = budget or _vmem_budget_bytes()
    if budget >= 80 * 1024 * 1024:          # v5e / v6e: 128 MiB physical VMEM
        tm_pref, tn_pref, tk_pref = 512, 1024, 1024
    else:                                   # v7x: 64 MiB physical VMEM
        tm_pref, tn_pref, tk_pref = 256, 512, 512

    M0, K0 = x.shape
    Kw, V0 = w.shape
    assert K0 == Kw

    # Zero-pad ragged dims so a lane/sublane-aligned tile divisor always exists
    # (avoids full-dim fallback tiles blowing VMEM for large vocab / K).
    Mp = _round_up(M0, SUBLANE_BF16)
    Kp = K0 if (K0 <= LANE or K0 % LANE == 0) else _round_up(K0, LANE)
    Vp = V0 if (V0 <= LANE or V0 % LANE == 0) else _round_up(V0, LANE)
    if Mp != M0 or Kp != K0:
        x = jnp.pad(x, ((0, Mp - M0), (0, Kp - K0)))
    if Kp != K0 or Vp != V0:
        w = jnp.pad(w, ((0, Kp - K0), (0, Vp - V0)))
    if Vp != V0:
        b = jnp.pad(b, ((0, 0), (0, Vp - V0)))

    tm = _pick_tile(Mp, tm_pref, SUBLANE_BF16)
    tn = _pick_tile(Vp, tn_pref, LANE)
    tk = _pick_tile(Kp, tk_pref, LANE)
    grid = (Mp // tm, Vp // tn, Kp // tk)

    out = pl.pallas_call(
        _linear_kernel,
        out_shape=jax.ShapeDtypeStruct((Mp, Vp), out_dtype),
        grid_spec=pltpu.PrefetchScalarGridSpec(
            num_scalar_prefetch=0,
            grid=grid,
            in_specs=[
                pl.BlockSpec((tm, tk), lambda i, j, k: (i, k)),
                pl.BlockSpec((tk, tn), lambda i, j, k: (k, j)),
                pl.BlockSpec((1, tn), lambda i, j, k: (0, j)),
            ],
            out_specs=pl.BlockSpec((tm, tn), lambda i, j, k: (i, j)),
            scratch_shapes=[pltpu.VMEM((tm, tn), jnp.float32)],
        ),
        compiler_params=pltpu.CompilerParams(
            dimension_semantics=("parallel", "parallel", "arbitrary"),
            vmem_limit_bytes=budget,
        ),
    )(x, w, b)
    if Mp != M0 or Vp != V0:
        out = out[:M0, :V0]
    return out


# ----------------------------------------------------------------------------
# Fused (both directions) GRU recurrence kernel. gi (with r/z biases folded) is
# precomputed; each grid step consumes a chunk of C timesteps and carries the
# per-direction hidden states in a persistent f32 VMEM scratch. Gate order is
# PyTorch (r,z,n). The backward direction walks blocks in reverse via its
# index_map and walks timesteps in reverse inside the chunk.
# ----------------------------------------------------------------------------
def _gru_chunk_kernel(*refs, chunk, hidden_p, ndirs, unroll):
    gi_refs = refs[:ndirs]
    h0_ref, whh_ref, bhn_ref = refs[ndirs:ndirs + 3]
    out_refs = refs[ndirs + 3:ndirs + 3 + ndirs]
    h_scratch = refs[ndirs + 3 + ndirs]

    Hp = hidden_p
    Bp = gi_refs[0].shape[1]
    g = pl.program_id(0)

    @pl.when(g == 0)
    def _():
        h_scratch[...] = h0_ref[...]

    # Hoist the n-gate recurrent-bias broadcast out of the step loop
    # (broadcast_in_dim is not CSE'd by JAX).
    bhn = [jnp.broadcast_to(bhn_ref[d], (Bp, Hp)) for d in range(ndirs)]

    def step(i, hs):
        new_hs = []
        for d in range(ndirs):
            reverse = (d == 1)
            c = (chunk - 1 - i) if reverse else i
            h = hs[d]                                            # f32 (Bp, Hp)
            gi = gi_refs[d][c].astype(jnp.float32)               # (Bp, 3Hp)
            h_b = h.astype(jnp.bfloat16)
            # rz matmul first so the sigmoids start while the n slice is still
            # draining from the MXU.
            gh_rz = jnp.dot(h_b, whh_ref[d, :, :2 * Hp],
                            preferred_element_type=jnp.float32)
            gh_n = jnp.dot(h_b, whh_ref[d, :, 2 * Hp:],
                           preferred_element_type=jnp.float32)
            # sigmoid via tanh identity: one EUP push on the serial r->n path.
            rz = 0.5 * (1.0 + jnp.tanh(0.5 * (gi[:, :2 * Hp] + gh_rz)))
            r = rz[:, :Hp]
            z = rz[:, Hp:]
            n = jnp.tanh(gi[:, 2 * Hp:] + r * (gh_n + bhn[d]))
            h_new = (1.0 - z) * n + z * h
            out_refs[d][c] = h_new.astype(out_refs[d].dtype)
            new_hs.append(h_new)
        return tuple(new_hs)

    h_init = tuple(h_scratch[d] for d in range(ndirs))
    h_final = lax.fori_loop(0, chunk, step, h_init, unroll=unroll)
    for d in range(ndirs):
        h_scratch[d] = h_final[d]


def _make_map(reverse, nb, last_block):
    if reverse:
        return lambda g: (nb - 1 - g, 0, last_block)
    return lambda g: (g, 0, last_block)


def gru_layers_pallas(gi, h0, w_hh, b_hh_n, *, hidden_p, dirs, budget):
    """gi: (T, Bp, dirs*3Hp) bf16; h0: (dirs, Bp, Hp) f32; w_hh: (dirs, Hp, 3Hp)
    bf16; b_hh_n: (dirs, 1, Hp) f32. Returns a tuple of `dirs` (T, Bp, Hp) bf16."""
    T, Bp, _ = gi.shape
    Hp = hidden_p
    chunk = _pick_chunk(T, Bp, Hp, dirs, budget)
    nb = T // chunk
    unroll = min(chunk, 8)   # cap unroll to bound vreg live ranges

    kernel = functools.partial(_gru_chunk_kernel, chunk=chunk, hidden_p=Hp,
                               ndirs=dirs, unroll=unroll)

    gi_specs, out_specs, out_shapes = [], [], []
    for d in range(dirs):
        rev = (d == 1)
        gi_specs.append(pl.BlockSpec((chunk, Bp, 3 * Hp), _make_map(rev, nb, d)))
        out_specs.append(pl.BlockSpec((chunk, Bp, Hp), _make_map(rev, nb, 0)))
        out_shapes.append(jax.ShapeDtypeStruct((T, Bp, Hp), jnp.bfloat16))

    in_specs = gi_specs + [
        pl.BlockSpec((dirs, Bp, Hp), lambda g: (0, 0, 0)),
        pl.BlockSpec((dirs, Hp, 3 * Hp), lambda g: (0, 0, 0)),
        pl.BlockSpec((dirs, 1, Hp), lambda g: (0, 0, 0)),
    ]

    outs = pl.pallas_call(
        kernel,
        out_shape=tuple(out_shapes),
        grid_spec=pltpu.PrefetchScalarGridSpec(
            num_scalar_prefetch=0,
            grid=(nb,),
            in_specs=in_specs,
            out_specs=out_specs,
            scratch_shapes=[pltpu.VMEM((dirs, Bp, Hp), jnp.float32)],
        ),
        compiler_params=pltpu.CompilerParams(
            dimension_semantics=("arbitrary",),   # sequential recurrence
            vmem_limit_bytes=budget,
        ),
    )(*([gi] * dirs), h0, w_hh, b_hh_n)
    return tuple(outs)


# ----------------------------------------------------------------------------
# Parameter padding to lane/sublane-dense layout (hidden-lane padding is exact
# zeros); weights are stored bf16 for the MXU, biases stay f32.
# ----------------------------------------------------------------------------
def _pad_axis(a, axis, new_size):
    pad = [(0, 0)] * a.ndim
    pad[axis] = (0, new_size - a.shape[axis])
    return jnp.pad(a, pad)


def _pad_gate_cols(w, H, Hp):
    """(..., 3H) -> (..., 3Hp): each gate block zero-padded to Hp lanes."""
    if Hp == H:
        return w
    gates = [_pad_axis(w[..., g * H:(g + 1) * H], -1, Hp) for g in range(3)]
    return jnp.concatenate(gates, axis=-1)


def _pad_in_rows(w, n_blocks, blk, blk_p):
    """(n_blocks*blk, C) -> (n_blocks*blk_p, C): zero rows appended per block."""
    if blk_p == blk:
        return w
    pieces = [_pad_axis(w[b * blk:(b + 1) * blk], 0, blk_p) for b in range(n_blocks)]
    return jnp.concatenate(pieces, axis=0)


def build_padded_params(emb_table, gru_params, clf_w, clf_b, hidden,
                        bidirectional, batch):
    dirs = 2 if bidirectional else 1
    H = hidden
    Hp = _round_up(H, LANE)
    Bp = _round_up(batch, SUBLANE_BF16)

    layers_p = []
    for layer_idx, layer in enumerate(gru_params):
        w_ih_cols, b_cols, whh_list, bhn_list = [], [], [], []
        for (w_ih, w_hh, b_ih, b_hh) in layer:
            if layer_idx == 0:
                w_ih_rows = w_ih                                   # (E, 3H)
            else:
                w_ih_rows = _pad_in_rows(w_ih, dirs, H, Hp)        # (Hp*dirs, 3H)
            w_ih_p = _pad_gate_cols(w_ih_rows, H, Hp)              # (*, 3Hp)
            w_hh_p = _pad_gate_cols(_pad_axis(w_hh, 0, Hp), H, Hp)  # (Hp, 3Hp)
            # Pre-fold b_ih + b_hh for r/z; the n gate keeps only b_ih here
            # (its b_hh part is applied inside r * (gh_n + b_hh_n)).
            b_comb = jnp.concatenate(
                [b_ih[:, :2 * H] + b_hh[:, :2 * H], b_ih[:, 2 * H:]], axis=-1)
            w_ih_cols.append(w_ih_p)
            b_cols.append(_pad_gate_cols(b_comb, H, Hp))           # (1, 3Hp)
            whh_list.append(w_hh_p)
            bhn_list.append(_pad_axis(b_hh[:, 2 * H:], -1, Hp))    # (1, Hp)
        layers_p.append(dict(
            w_ih=jnp.concatenate(w_ih_cols, axis=-1).astype(jnp.bfloat16),  # (fin, dirs*3Hp)
            b_proj=jnp.concatenate(b_cols, axis=-1),                         # (1, dirs*3Hp) f32
            w_hh=jnp.stack(whh_list).astype(jnp.bfloat16),                   # (dirs, Hp, 3Hp)
            b_hh_n=jnp.stack(bhn_list),                                      # (dirs, 1, Hp) f32
        ))

    clf_w_p = _pad_in_rows(clf_w, dirs, H, Hp).astype(jnp.bfloat16)          # (Hp*dirs, V)
    return dict(emb=emb_table, gru=layers_p, clf_w=clf_w_p, clf_b=clf_b,
                H=H, Hp=Hp, Bp=Bp, dirs=dirs)


# ----------------------------------------------------------------------------
# Full DecoderRNN forward (Pallas).
# ----------------------------------------------------------------------------
def decoder_forward(tokens, encoder_hidden, p):
    budget = _vmem_budget_bytes()
    B, T = tokens.shape
    H, Hp, Bp, dirs = p["H"], p["Hp"], p["Bp"], p["dirs"]

    # Embedding lookup is a gather (glue, not the hot path).
    embeds = jnp.take(p["emb"], tokens, axis=0)              # (B, T, E)
    x = jnp.transpose(embeds, (1, 0, 2))                     # (T, B, E)
    x = _pad_axis(x, 1, Bp).astype(jnp.bfloat16)             # (T, Bp, E) bf16

    for layer_idx, lp in enumerate(p["gru"]):
        fin = x.shape[-1]
        x_flat = x.reshape(T * Bp, fin)
        # Hoisted input projection for BOTH directions in one MXU pass; gi is
        # emitted bf16 (largest intermediate -> half the HBM stream).
        gi = linear_pallas(x_flat, lp["w_ih"], lp["b_proj"],
                           out_dtype=jnp.bfloat16, budget=budget)
        gi = gi.reshape(T, Bp, dirs * 3 * Hp)

        h0 = encoder_hidden[layer_idx * dirs:(layer_idx + 1) * dirs]   # (dirs,B,H)
        h0 = jnp.pad(h0, ((0, 0), (0, Bp - B), (0, Hp - H)))           # (dirs,Bp,Hp) f32

        outs = gru_layers_pallas(gi, h0, lp["w_hh"], lp["b_hh_n"],
                                 hidden_p=Hp, dirs=dirs, budget=budget)
        x = jnp.concatenate(outs, axis=-1) if dirs == 2 else outs[0]   # (T,Bp,Hp*dirs) bf16

    Dp = x.shape[-1]
    # Transpose BEFORE the classifier (Dp columns) instead of transposing the
    # (T, Bp, V) logits afterwards (V columns) -> less HBM transpose traffic.
    x_bt = jnp.transpose(x, (1, 0, 2)).reshape(Bp * T, Dp)
    logits = linear_pallas(x_bt, p["clf_w"], p["clf_b"],
                           out_dtype=jnp.float32, budget=budget)
    V = logits.shape[-1]
    return logits.reshape(Bp, T, V)[:B]                      # (B, T, V)


# ----------------------------------------------------------------------------
# Pure-JAX f32 reference (native, unpadded) for the correctness check.
# ----------------------------------------------------------------------------
def gru_layer_ref(x_tbe, h0, w_ih, w_hh, b_ih, b_hh):
    H = h0.shape[-1]

    def step(h, x_t):
        gi = x_t @ w_ih + b_ih
        gh = h @ w_hh + b_hh
        r = jax.nn.sigmoid(gi[:, :H] + gh[:, :H])
        z = jax.nn.sigmoid(gi[:, H:2 * H] + gh[:, H:2 * H])
        n = jnp.tanh(gi[:, 2 * H:] + r * gh[:, 2 * H:])
        h_new = (1.0 - z) * n + z * h
        return h_new, h_new

    _, out = jax.lax.scan(step, h0, x_tbe)
    return out


def decoder_forward_ref(tokens, encoder_hidden, emb_table, gru_params,
                        clf_w, clf_b, bidirectional):
    embeds = jnp.take(emb_table, tokens, axis=0)
    x = jnp.transpose(embeds, (1, 0, 2))
    dirs = 2 if bidirectional else 1
    for layer, layer_params in enumerate(gru_params):
        outs = []
        for d, (w_ih, w_hh, b_ih, b_hh) in enumerate(layer_params):
            h0 = encoder_hidden[layer * dirs + d]
            xin = x[::-1] if d == 1 else x
            out = gru_layer_ref(xin, h0, w_ih, w_hh, b_ih, b_hh)
            if d == 1:
                out = out[::-1]
            outs.append(out)
        x = jnp.concatenate(outs, axis=-1) if dirs == 2 else outs[0]
    output = jnp.transpose(x, (1, 0, 2))
    B, T, D = output.shape
    return (output.reshape(B * T, D) @ clf_w + clf_b).reshape(B, T, -1)


# ----------------------------------------------------------------------------
# Deterministic parameter init (PyTorch-style uniform +/- 1/sqrt(H)).
# ----------------------------------------------------------------------------
def init_params(key, vocab, emb, hidden, layers, bidirectional):
    dirs = 2 if bidirectional else 1
    k = 1.0 / np.sqrt(hidden)

    key, ke = jax.random.split(key)
    emb_table = jax.random.normal(ke, (vocab, emb), jnp.float32)

    gru_params = []
    for layer in range(layers):
        in_sz = emb if layer == 0 else hidden * dirs
        layer_params = []
        for _ in range(dirs):
            key, k1, k2, k3, k4 = jax.random.split(key, 5)
            w_ih = jax.random.uniform(k1, (in_sz, 3 * hidden), jnp.float32, -k, k)
            w_hh = jax.random.uniform(k2, (hidden, 3 * hidden), jnp.float32, -k, k)
            b_ih = jax.random.uniform(k3, (1, 3 * hidden), jnp.float32, -k, k)
            b_hh = jax.random.uniform(k4, (1, 3 * hidden), jnp.float32, -k, k)
            layer_params.append((w_ih, w_hh, b_ih, b_hh))
        gru_params.append(layer_params)

    clf_in = hidden * dirs
    kc = 1.0 / np.sqrt(clf_in)
    key, k1, k2 = jax.random.split(key, 3)
    clf_w = jax.random.uniform(k1, (clf_in, vocab), jnp.float32, -kc, kc)
    clf_b = jax.random.uniform(k2, (1, vocab), jnp.float32, -kc, kc)
    return emb_table, gru_params, clf_w, clf_b, key


if __name__ == "__main__":
    VOCAB = 16
    EMB = 32
    HIDDEN = 32
    LAYERS = 2
    BIDIR = True
    B, T = 2, 8
    DIRS = 2 if BIDIR else 1

    key = jax.random.PRNGKey(0)
    emb_table, gru_params, clf_w, clf_b, key = init_params(
        key, VOCAB, EMB, HIDDEN, LAYERS, BIDIR)

    key, kt, kh = jax.random.split(key, 3)
    tokens = jax.random.randint(kt, (B, T), 0, VOCAB, dtype=jnp.int32)
    encoder_hidden = jax.random.normal(kh, (LAYERS * DIRS, B, HIDDEN), jnp.float32)

    padded = build_padded_params(emb_table, gru_params, clf_w, clf_b,
                                 HIDDEN, BIDIR, B)

    logits = decoder_forward(tokens, encoder_hidden, padded)
    logits = jax.block_until_ready(logits)

    ref = decoder_forward_ref(tokens, encoder_hidden, emb_table, gru_params,
                              clf_w, clf_b, BIDIR)
    ref = jax.block_until_ready(ref)

    assert logits.shape == (B, T, VOCAB), logits.shape
    # Tolerance reflects bf16 MXU operands / bf16 intermediates vs f32 reference.
    np.testing.assert_allclose(np.asarray(logits), np.asarray(ref),
                               rtol=5e-2, atol=5e-2)
    print("KERNEL_OK")
</pallas_src>

<mosaic_0001>
module attributes {stable_mosaic.version = 11 : i64} {
  func.func @_linear_kernel(%arg0: i32, %arg1: i32, %arg2: i32, %arg3: memref<128x32xbf16, #tpu.memory_space<vmem>>, %arg4: memref<32x384xbf16, #tpu.memory_space<vmem>>, %arg5: memref<1x384xf32, #tpu.memory_space<vmem>>, %arg6: memref<128x384xbf16, #tpu.memory_space<vmem>>, %arg7: memref<128x384xf32, #tpu.memory_space<vmem>>) attributes {dimension_semantics = [#tpu.dimension_semantics<parallel>, #tpu.dimension_semantics<parallel>, #tpu.dimension_semantics<arbitrary>], iteration_bounds = array<i64: 1, 2, 1>, scalar_prefetch = 0 : i64, scratch_operands = 1 : i64, tpu.core_type = #tpu.core_type<tc>, window_params = [{transform_indices = @transform_0, window_bounds = array<i64: 128, 32>}, {transform_indices = @transform_1, window_bounds = array<i64: 32, 384>}, {transform_indices = @transform_2, window_bounds = array<i64: 1, 384>}, {transform_indices = @transform_3, window_bounds = array<i64: 128, 384>}]} {
    %c0_i32 = arith.constant 0 : i32
    %0 = arith.cmpi eq, %arg2, %c0_i32 : i32
    %1 = arith.extui %0 : i1 to i32
    %c0_i32_0 = arith.constant 0 : i32
    %2 = arith.cmpi ne, %1, %c0_i32_0 : i32
    scf.if %2 {
      %cst_10 = arith.constant 0.000000e+00 : f32
      %12 = vector.broadcast %cst_10 : f32 to vector<128x384xf32>
      %c0_11 = arith.constant 0 : index
      %c0_12 = arith.constant 0 : index
      %13 = vector.load %arg7[%c0_11, %c0_12] : memref<128x384xf32, #tpu.memory_space<vmem>>, vector<128x384xf32>
      tpu.vector_store %arg7[%c0_11, %c0_12], %12 {strides = array<i32>} : memref<128x384xf32, #tpu.memory_space<vmem>>, vector<128x384xf32>,
    } else {
    }
    %c0 = arith.constant 0 : index
    %c0_1 = arith.constant 0 : index
    %3 = vector.load %arg7[%c0, %c0_1] : memref<128x384xf32, #tpu.memory_space<vmem>>, vector<128x384xf32>
    %c0_2 = arith.constant 0 : index
    %c0_3 = arith.constant 0 : index
    %4 = vector.load %arg3[%c0_2, %c0_3] : memref<128x32xbf16, #tpu.memory_space<vmem>>, vector<128x32xbf16>
    %c0_4 = arith.constant 0 : index
    %c0_5 = arith.constant 0 : index
    %5 = vector.load %arg4[%c0_4, %c0_5] : memref<32x384xbf16, #tpu.memory_space<vmem>>, vector<32x384xbf16>
    %cst = arith.constant dense<0.000000e+00> : vector<128x384xf32>
    %6 = tpu.matmul %4, %5, %cst {dimension_numbers = #tpu.dot_dimension_numbers<[1], [0], [0], [1], [0, 0, 1, 1], [], []>} : vector<128x32xbf16>, vector<32x384xbf16>, vector<128x384xf32> -> vector<128x384xf32>
    %7 = arith.addf %3, %6 : vector<128x384xf32>
    %c0_6 = arith.constant 0 : index
    %c0_7 = arith.constant 0 : index
    %8 = vector.load %arg7[%c0_6, %c0_7] : memref<128x384xf32, #tpu.memory_space<vmem>>, vector<128x384xf32>
    tpu.vector_store %arg7[%c0_6, %c0_7], %7 {strides = array<i32>} : memref<128x384xf32, #tpu.memory_space<vmem>>, vector<128x384xf32>,
    %c0_i32_8 = arith.constant 0 : i32
    %9 = arith.cmpi eq, %arg2, %c0_i32_8 : i32
    %10 = arith.extui %9 : i1 to i32
    %c0_i32_9 = arith.constant 0 : i32
    %11 = arith.cmpi ne, %10, %c0_i32_9 : i32
    scf.if %11 {
      %c0_10 = arith.constant 0 : index
      %c0_11 = arith.constant 0 : index
      %12 = vector.load %arg7[%c0_10, %c0_11] : memref<128x384xf32, #tpu.memory_space<vmem>>, vector<128x384xf32>
      %c0_12 = arith.constant 0 : index
      %c0_13 = arith.constant 0 : index
      %13 = vector.load %arg5[%c0_12, %c0_13] : memref<1x384xf32, #tpu.memory_space<vmem>>, vector<1x384xf32>
      %14 = vector.broadcast %13 : vector<1x384xf32> to vector<128x384xf32>
      %15 = arith.addf %12, %14 : vector<128x384xf32>
      %16 = arith.truncf %15 : vector<128x384xf32> to vector<128x384xbf16>
      %c0_14 = arith.constant 0 : index
      %c0_15 = arith.constant 0 : index
      %17 = vector.load %arg6[%c0_14, %c0_15] : memref<128x384xbf16, #tpu.memory_space<vmem>>, vector<128x384xbf16>
      tpu.vector_store %arg6[%c0_14, %c0_15], %16 {strides = array<i32>} : memref<128x384xbf16, #tpu.memory_space<vmem>>, vector<128x384xbf16>,
    } else {
    }
    return
  }
  func.func @transform_0(%arg0: i32, %arg1: i32, %arg2: i32) -> (i32, i32) {
    %c0_i32 = arith.constant 0 : i32
    return %arg0, %arg2 : i32, i32
  }
  func.func @transform_1(%arg0: i32, %arg1: i32, %arg2: i32) -> (i32, i32) {
    %c0_i32 = arith.constant 0 : i32
    return %arg2, %arg1 : i32, i32
  }
  func.func @transform_2(%arg0: i32, %arg1: i32, %arg2: i32) -> (i32, i32) {
    %c0_i32 = arith.constant 0 : i32
    %c0_i32_0 = arith.constant 0 : i32
    return %c0_i32, %arg1 : i32, i32
  }
  func.func @transform_3(%arg0: i32, %arg1: i32, %arg2: i32) -> (i32, i32) {
    %c0_i32 = arith.constant 0 : i32
    return %arg0, %arg1 : i32, i32
  }
}

</mosaic_0001>

<bundles_post_ra>
// kernel: tpu_custom_call.1
= control target key start
LH: loop header
LB: loop body
LE: loop exit
PB: predicated region body
PF: predicated region fallthrough
CT: control target
= control target key end

     0   :  { %8 = vsyncpa [#allocation4], 0  ;;  %s1919_s0 = inlined_call_operand.vmem [shape: bf16[128,32], index: 0, kind: input, shape index: {}]   ;;  %s1920_s1 = inlined_call_operand.hbm [shape: bf16[32,768], index: 1, kind: input, shape index: {}]   ;;  %s1921_s2 = inlined_call_operand.vmem [shape: f32[1,768], index: 2, kind: input, shape index: {}]   ;;  %s1922_s3 = inlined_call_operand.hbm [shape: bf16[128,768], index: 3, kind: output, shape index: {}]  }
   0x1   :  { %10 = vsyncpa [#allocation4 + $0x1], 0 }
   0x2   :  { %11 = vsyncpa [#allocation5], 0 }
   0x3   :  { %13 = vsyncpa [#allocation5 + $0x1], 0  ;;  %s1612_s12 = smov 0   ;;  %s1614_s13 = smov 0  }
   0x4   :  { %s1616_s14 = smov 0   ;;  %s1618_s15 = smov 0  }
   0x5   :  { %s1620_s16 = smov 0   ;;  %s1622_s17 = smov 0  }
   0x6 LB: > { %s1241_s18 = sadd.s32 4294967295, %s1581_s17   ;;  %s1242_s19 = sadd.s32 4294967294, %s1581_s17   ;;  %s1581_s17 = sphi %s1622_s17, %s19_s17   ;;  %s1577_s16 = sphi %s1620_s16, %s1936_s16   ;;  %s1573_s15 = sphi %s1618_s15, %s1935_s15   ;;  %s1569_s14 = sphi %s1616_s14, %s1934_s14   ;;  %s1565_s13 = sphi %s1614_s13, %s1933_s13   ;;  %s1561_s12 = sphi %s1612_s12, %s1932_s12  }
   0x7   : > { %s34_s20 = sadd.s32 1, %s1577_s16  ;;  %s75_s21 = sadd.s32 1, %s1569_s14 }
   0x8   : > { %p36_p0 = scmp.ge.s32.totalorder %s34_s20, 2  ;;  %p82_p1 = scmp.ne.s32.totalorder %s1569_s14, %s1565_s13 }
   0x9   : > { %p83_p2 = scmp.eq.s32.totalorder %s1581_s17, 0  ;;  %p88_p3 = scmp.ne.s32.totalorder %s1565_s13, %s1561_s12 }
   0xa   : > { %s1938_s20 = smov (%p36_p0, %s34_s20), 0  ;;  %p89_p5 = scmp.eq.s32.totalorder %s1241_s18, 0 }
   0xb   : > { %p1653_p4 = por %p83_p2, %p82_p1  ;;  %s71_s23 = ssub.s32 %s1577_s16, %s1938_s20 }
   0xc   : > { %p140_p6 = scmp.eq.s32.totalorder %s1241_s18, 1  ;;  %p73_p7 = scmp.eq.s32.totalorder %s71_s23, 0 }
   0xd   : > { %p1659_p8 = por %p89_p5, %p88_p3  ;;  %p146_p10 = scmp.eq.s32.totalorder %s1242_s19, 1 }
   0xe   : > { %p1663_p9 = por %p140_p6, %p82_p1  ;;  %p1396_p13 = scmp.lt.s32.totalorder %s1581_s17, 2 }
   0xf   : > { %s1668_s26 = scalar_select %p73_p7, %s1569_s14, %s75_s21  }
  0x10   : > { %s1926_s25 = scalar_select %p1663_p9, 1, 0 }
  0x11   : > { %p1670_p11 = por %p146_p10, %p88_p3  ;;  %s178_s28 = sand.u32 1, %s1569_s14  }
  0x12   : > { %s1381_s29 = smul.u32 48, %s178_s28  ;;  %p1680_p0 = pnand %p1396_p13, %p1653_p4 }
  0x13   : > { %s1927_s27 = scalar_select %p1670_p11, 1, 0 }
  0x14   : > { %s1313_s30 = smul.u32 192, %s1577_s16  ;;  %s182_s8 = scalar_lea.vmem [#allocation3], %s1381_s29 }
  0x15   : > { %s192_s9 = sshll.u32 %s182_s8, 4  ;;  %s1691_s10 = scalar_lea.sflag [#allocation4], %s178_s28  ;;  %s1689_s9 = int_to_ptr.vmem [resolvable:$true] %s192_s9 }
  0x16   : > { %s1687_s7 = scalar_lea.hbm %s1920_s1, %s1313_s30  ;;  %p1471_p2 = pneg %p1680_p0 }
  0x17   : > { %s1469_s11 = scalar_lea.hbm %s1687_s7, 768  ;;  %s1474_s21 = scalar_lea.hbm %s1920_s1, 1536 }
  0x18   : > { %p1470_p1 = scmp.ne.s32.totalorder %s1687_s7, %s1469_s11  ;;  %p1475_p5 = scmp.lt.u32.totalorder %s1687_s7, %s1920_s1 }
  0x19   : > { %p1476_p6 = scmp.lt.u32.totalorder %s1474_s21, %s1469_s11  ;;  %p1478_p10 = scmp.lt.u32.totalorder %s1469_s11, %s1687_s7 }
  0x1a   : > { %p1472_p3 = pnand %p1471_p2, %p1470_p1 }
  0x1b   : > { %p1477_p7 = por %p1476_p6, %p1475_p5 }
  0x1c   : > { %p1473_p4 = pneg %p1472_p3 }
  0x1d   : > { %p1479_p13 = por %p1478_p10, %p1477_p7 }
  0x1f   : > { %p1480_p12 = pnand %p1479_p13, %p1473_p4 }
  0x21   : > { %1483 = shalt.err (!%p1480_p12)
}
  0x22   : > { %s1484_s28 = scalar_lea.vmem %s1689_s9, 768  ;;  %s1583_s29 = smov [#allocation3]  }
  0x23   : > { %p1485_p1 = scmp.ne.s32.totalorder %s1689_s9, %s1484_s28  ;;  %s1489_s30 = sshll.u32 %s1583_s29, 4  ;;  %s1490_s30 = int_to_ptr.vmem [resolvable:$false] %s1489_s30 }
  0x24   : > { %s1491_s5 = scalar_lea.vmem %s1490_s30, 1536  ;;  %p1492_p9 = scmp.lt.s32.totalorder %s1689_s9, %s1490_s30 }
  0x25   : > { %p1487_p3 = pnand %p1485_p1, %p1471_p2  ;;  %p1493_p5 = scmp.lt.s32.totalorder %s1491_s5, %s1484_s28 }
  0x27   : > { %p1488_p11 = pneg %p1487_p3  ;;  %p1494_p6 = por %p1493_p5, %p1492_p9 }
  0x29   : > { %p1495_p7 = pnand %p1494_p6, %p1488_p11 }
  0x2b   : > { %1498 = shalt.err (!%p1495_p7)
}
  0x2c   : > { %s1584_s6 = smov 384   ;;  %s1585_s8 = smov 192  }
  0x2d   : > { %s1586_s11 = smov 12   ;;  %p1247_p12 = scmp.ge.s32.totalorder %s1581_s17, 1 }
  0x2e   : > { %1391 = dma.hbm_to_vmem [thread:$0]  (!%p1680_p0), %s1687_s7, 768, %s1689_s9, %s1691_s10, %s1584_s6, %s1585_s8, %s1586_s11  }
  0x2f   : > { %p208_p2 = scmp.lt.s32.totalorder %s1581_s17, 3 }
  0x31   : > { %p209_p4 = pnand %p1247_p12, %p208_p2 }
  0x32   : > { %s1722_s18 = sand.u32 (!%p209_p4), 1, %s1565_s13  }
  0x33   : > { %212 = sbr.rel (%p209_p4) target bundleno = 344 (0x158), region = 32  ;;  %s215_s21 = scalar_lea.sflag (!%p209_p4), [#allocation4], %s1722_s18 }
  0x34   : > { %s1382_s19 = smul.u32 (!%p209_p4), 48, %s1722_s18 }
  0x36   : > { %s218_s22 = scalar_lea.vmem (!%p209_p4), [#allocation3], %s1382_s19 }
  0x3a   : > { %1552 = dma.done.wait (%p1659_p8), %s215_s21, 768  }
  0x3b   : > { %1554 = vsyncadd (%p1659_p8), %s215_s21, 4294966528  ;;  %v1587_v0 = vmov 0   ;;  %v1453_v1 = vld [vmem:[%s218_s22 + $0x4] ss:$12 sps:$4 sm:$0xff]   ;;  %v1455_v2 = vld [vmem:[%s218_s22] ss:$12 sps:$4 sm:$0xff]   ;;  %v852_v15 = vlaneseq }
  0x3c   : > { %525 = vmatprep.mubr.bf16.mxu0 %v1587_v0  ;;  %585 = vmatprep.mubr.bf16.mxu1 %v1587_v0  ;;  %v1456_v3 = vld [vmem:[%s218_s22 + $0x1c] ss:$12 sps:$4 sm:$0xff]   ;;  %v1458_v4 = vld [vmem:[%s218_s22 + $0x18] ss:$12 sps:$4 sm:$0xff]   ;;  %vm468_vm0 = vcmask 261120   ;;  %s264_s4 = smul.u32 3, %s1573_s15 }
  0x3d   : > { %493 = vmatprep.subr.bf16.mxu0 %v1453_v1  ;;  %1377 = vmatprep.subr.bf16.mxu1 %v1453_v1  ;;  %v1459_v5 = vld [vmem:[%s1919_s0] sm:$0xff]   ;;  %v1460_v7 = vld [vmem:[%s1919_s0 + $0x30] sm:$0xff]   ;;  %v1462_v9 = vld [vmem:[%s1919_s0 + $0x8] sm:$0xff]   ;;  %v853_v16 = vshrl.u32 %v852_v15, 7  ;;  %s1383_s10 = smul.u32 192, %s1722_s18  ;;  %s1108_s6 = scalar_lea.sflag [#allocation5], %s1722_s18 }
  0x3e   : > { %494 = vmatpush1.bf16.msra.mxu0 %v1455_v2  ;;  %1379 = vmatpush1.bf16.msra.mxu1 %v1455_v2  ;;  %v1461_v6 = vld [vmem:[%s218_s22 + $0x8] ss:$12 sps:$4 sm:$0xff]   ;;  %v1464_v8 = vld [vmem:[%s218_s22 + $0x20] ss:$12 sps:$4 sm:$0xff]   ;;  %p265_p8 = scmp.lt.s32.totalorder %s264_s4, 5  ;;  %s1346_s28 = smul.u32 192, %s1573_s15 }
  0x3f   : > { %495 = vmatprep.subr.bf16.mxu0 %v1456_v3  ;;  %1378 = vmatprep.subr.bf16.mxu1 %v1456_v3  ;;  %v1463_v10 = vld [vmem:[%s1919_s0 + $0x38] sm:$0xff]   ;;  %v1465_v11 = vld [vmem:[%s1919_s0 + $0x10] sm:$0xff]   ;;  %v1467_v13 = vld [vmem:[%s1919_s0 + $0x20] sm:$0xff]   ;;  %v854_v17 = vsub.s32 0, %v853_v16  ;;  %v858_v19 = vsub.s32 1, %v853_v16  ;;  %s1787_s23 = scalar_lea.vmem [#allocation6], %s1383_s10 }
  0x40   : > { %v1466_v12 = vld [vmem:[%s1919_s0 + $0x18] sm:$0xff]   ;;  %v1468_v14 = vld [vmem:[%s1919_s0 + $0x28] sm:$0xff]   ;;  %s1940_s4 = smov (!%p265_p8, %s264_s4), 5  ;;  %v862_v48 = vsub.s32 2, %v853_v16  ;;  %s1124_s29 = sshll.u32 %s1787_s23, 4  ;;  %s1865_s29 = int_to_ptr.vmem [resolvable:$true] %s1124_s29 }
  0x41   : > { %s267_s9 = scalar_lea.vmem %s1921_s2, %s1940_s4  ;;  %s1862_s5 = scalar_lea.hbm %s1922_s3, %s1346_s28 }
  0x42   : > { %496 = vmatpush1.bf16.msra.mxu0 %v1458_v4  ;;  %1380 = vmatpush1.bf16.msra.mxu1 %v1458_v4  ;;  %v850_v18 = vld [vmem:[%s267_s9] sm:$0x7]  ;;  %s1499_s8 = scalar_lea.vmem %s1865_s29, 3072  ;;  %p1929_p11 = scmp.ne.s32.totalorder %s1926_s25, 0 }
  0x43   : > { %1357 = vmatprep.subr.bf16.mxu1 %v1461_v6  ;;  %v1774_v20 = vrot.slane %v850_v18, %v854_v17  ;;  %v1776_v21 = vrot.slane %v850_v18, %v858_v19  ;;  %v1801_v61 = vrot.slane %v850_v18, %v862_v48  ;;  %p1500_p9 = scmp.ne.s32.totalorder %s1865_s29, %s1499_s8  ;;  %s1588_s11 = smov [#allocation6]  }
  0x44   : > { %s1503_s19 = sshll.u32 %s1588_s11, 4  ;;  %s1504_s19 = int_to_ptr.vmem [resolvable:$false] %s1503_s19 }
  0x45   : > { %1262 = vmatmul.mubr.msk.bf16.vlgmr.msra.gmra.mrb[0].mxu0 %vm468_vm0, %v1459_v5  ;;  %1268 = vmatmul.mubr.msk.bf16.vlgmr.msra.gmra.mrb[0].mxu1 %vm468_vm0, %v1460_v7  ;;  %p1501_p0 = pnand %p1500_p9, %p1929_p11  ;;  %s1505_s21 = scalar_lea.vmem %s1504_s19, 6144 }
  0x46   : > { %1358 = vmatpush3.bf16.msra.mxu1 %v1461_v6  ;;  %535 = vmatprep.mubr.bf16.mxu0 %v1587_v0  ;;  %p1506_p13 = scmp.lt.s32.totalorder %s1865_s29, %s1504_s19  ;;  %p1507_p1 = scmp.lt.s32.totalorder %s1505_s21, %s1499_s8 }
  0x47   : > { %595 = vmatprep.mubr.bf16.mxu1 %v1587_v0  ;;  %1359 = vmatprep.subr.bf16.mxu1 %v1464_v8  ;;  %p1502_p10 = pneg %p1501_p0 }
  0x48   : > { %p1508_p3 = por %p1507_p1, %p1506_p13 }
  0x4a   : > { %1360 = vmatpush3.bf16.msra.mxu1 %v1464_v8  ;;  %p1509_p5 = pnand %p1508_p3, %p1502_p10 }
  0x4d   : > { %1263 = vmatmul.mubr.msk.bf16.gmra.mrb[4].mxu0 %vm468_vm0, %v1462_v9  ;;  %1269 = vmatmul.mubr.msk.bf16.gmra.mrb[4].mxu1 %vm468_vm0, %v1463_v10 }
  0x4e   : > { %545 = vmatprep.mubr.bf16.mxu0 %v1587_v0  ;;  %1361 = vmatprep.mubr.msk.bf16.mxu1 %vm468_vm0, %v1459_v5 }
  0x55   : > { %1264 = vmatmul.mubr.msk.bf16.gmra.mrb[8].mxu0 %vm468_vm0, %v1465_v11  ;;  %1362 = vmatmul.mubr.msk.bf16.vlgmr.msra.gmra.mrb[8].mxu1 %vm468_vm0, %v1462_v9 }
  0x56   : > { %555 = vmatprep.mubr.bf16.mxu0 %v1587_v0  ;;  %1365 = vmatprep.mubr.msk.bf16.mxu1 %vm468_vm0, %v1465_v11 }
  0x5d   : > { %1265 = vmatmul.mubr.msk.bf16.gmra.mrb[12].mxu0 %vm468_vm0, %v1466_v12  ;;  %1366 = vmatmul.mubr.msk.bf16.gmra.mrb[12].mxu1 %vm468_vm0, %v1466_v12 }
  0x5e   : > { %565 = vmatprep.mubr.bf16.mxu0 %v1587_v0  ;;  %1369 = vmatprep.mubr.msk.bf16.mxu1 %vm468_vm0, %v1467_v13 }
  0x65   : > { %1266 = vmatmul.mubr.msk.bf16.gmra.mrb[16].mxu0 %vm468_vm0, %v1467_v13  ;;  %1370 = vmatmul.mubr.msk.bf16.gmra.mrb[16].mxu1 %vm468_vm0, %v1468_v14 }
  0x66   : > { %575 = vmatprep.mubr.bf16.mxu0 %v1587_v0  ;;  %1373 = vmatprep.mubr.msk.bf16.mxu1 %vm468_vm0, %v1460_v7 }
  0x6d   : > { %1267 = vmatmul.mubr.msk.bf16.gmra.mrb[20].mxu0 %vm468_vm0, %v1468_v14  ;;  %1374 = vmatmul.mubr.msk.bf16.gmra.mrb[20].mxu1 %vm468_vm0, %v1463_v10 }
 0x118   : > { %v527_v22 = vpop.f32.mrb[0].mxu0  ;;  %v587_v23 = vpop.f32.mrb[0].mxu1 }
 0x119   : > { %v867_v24 = vadd.f32 %v1774_v20, %v527_v22  ;;  %v903_v25 = vadd.f32 %v1774_v20, %v587_v23  ;;  %v529_v26 = vpop.f32.mrb[1].mxu0  ;;  %v589_v27 = vpop.f32.mrb[1].mxu1 }
 0x11a   : > { %v868_v28 = vadd.f32 %v1776_v21, %v529_v26  ;;  %v904_v29 = vadd.f32 %v1776_v21, %v589_v27  ;;  %v531_v30 = vpop.f32.mrb[2].mxu0  ;;  %v591_v31 = vpop.f32.mrb[2].mxu1 }
 0x11b   : > { %v870_v32 = vadd.f32 %v1774_v20, %v531_v30  ;;  %v906_v33 = vadd.f32 %v1774_v20, %v591_v31  ;;  %v533_v34 = vpop.f32.mrb[3].mxu0  ;;  %v593_v35 = vpop.f32.mrb[3].mxu1 }
 0x11c   : > { %v1314_v36 = vpack.c.bf16 %v868_v28, %v867_v24  ;;  %v1338_v37 = vpack.c.bf16 %v904_v29, %v903_v25  ;;  %v871_v38 = vadd.f32 %v1776_v21, %v533_v34  ;;  %v907_v39 = vadd.f32 %v1776_v21, %v593_v35 }
 0x11e   : > { %1075 = vst [vmem:[%s1787_s23] sm:$0xff] %v1314_v36  ;;  %1099 = vst [vmem:[%s1787_s23 + $0x90] sm:$0xff] %v1338_v37  ;;  %v1316_v40 = vpack.c.bf16 %v871_v38, %v870_v32  ;;  %v1340_v41 = vpack.c.bf16 %v907_v39, %v906_v33 }
 0x120   : > { %1077 = vst [vmem:[%s1787_s23 + $0xc] sm:$0xff] %v1316_v40  ;;  %1101 = vst [vmem:[%s1787_s23 + $0x9c] sm:$0xff] %v1340_v41  ;;  %v537_v42 = vpop.f32.mrb[4].mxu0  ;;  %v597_v43 = vpop.f32.mrb[4].mxu1 }
 0x121   : > { %v873_v44 = vadd.f32 %v1774_v20, %v537_v42  ;;  %v909_v45 = vadd.f32 %v1774_v20, %v597_v43  ;;  %v539_v46 = vpop.f32.mrb[5].mxu0  ;;  %v599_v47 = vpop.f32.mrb[5].mxu1 }
 0x122   : > { %v874_v49 = vadd.f32 %v1776_v21, %v539_v46  ;;  %v910_v50 = vadd.f32 %v1776_v21, %v599_v47  ;;  %v541_v51 = vpop.f32.mrb[6].mxu0  ;;  %v601_v52 = vpop.f32.mrb[6].mxu1 }
 0x123   : > { %v876_v53 = vadd.f32 %v1774_v20, %v541_v51  ;;  %v912_v54 = vadd.f32 %v1774_v20, %v601_v52  ;;  %v543_v55 = vpop.f32.mrb[7].mxu0  ;;  %v603_v56 = vpop.f32.mrb[7].mxu1 }
 0x124   : > { %v1318_v57 = vpack.c.bf16 %v874_v49, %v873_v44  ;;  %v1342_v58 = vpack.c.bf16 %v910_v50, %v909_v45  ;;  %v877_v59 = vadd.f32 %v1776_v21, %v543_v55  ;;  %v913_v60 = vadd.f32 %v1776_v21, %v603_v56 }
 0x126   : > { %1079 = vst [vmem:[%s1787_s23 + $0x18] sm:$0xff] %v1318_v57  ;;  %1103 = vst [vmem:[%s1787_s23 + $0xa8] sm:$0xff] %v1342_v58  ;;  %v1320_v62 = vpack.c.bf16 %v877_v59, %v876_v53  ;;  %v1344_v63 = vpack.c.bf16 %v913_v60, %v912_v54 }
 0x128   : > { %1081 = vst [vmem:[%s1787_s23 + $0x24] sm:$0xff] %v1320_v62  ;;  %1105 = vst [vmem:[%s1787_s23 + $0xb4] sm:$0xff] %v1344_v63  ;;  %v547_v0 = vpop.f32.mrb[8].mxu0  ;;  %v1363_v1 = vpop.f32.mrb[8].mxu1 }
 0x129   : > { %v879_v2 = vadd.f32 %v1774_v20, %v547_v0  ;;  %v875_v3 = vadd.f32 %v1363_v1, %v1801_v61  ;;  %v549_v4 = vpop.f32.mrb[9].mxu0  ;;  %v640_v5 = vpop.f32.mrb[9].mxu1 }
 0x12a   : > { %v880_v6 = vadd.f32 %v1776_v21, %v549_v4  ;;  %v869_v7 = vadd.f32 %v1801_v61, %v640_v5  ;;  %v551_v8 = vpop.f32.mrb[10].mxu0  ;;  %v1364_v9 = vpop.f32.mrb[10].mxu1 }
 0x12b   : > { %v1319_v10 = vpack.c.bf16 %v875_v3, %v875_v3  ;;  %v882_v11 = vadd.f32 %v1774_v20, %v551_v8  ;;  %v878_v12 = vadd.f32 %v1364_v9, %v1801_v61  ;;  %v553_v13 = vpop.f32.mrb[11].mxu0  ;;  %v643_v14 = vpop.f32.mrb[11].mxu1 }
 0x12c   : > { %v1322_v15 = vpack.c.bf16 %v880_v6, %v879_v2  ;;  %v1315_v16 = vpack.c.bf16 %v869_v7, %v869_v7  ;;  %v883_v17 = vadd.f32 %v1776_v21, %v553_v13  ;;  %v872_v18 = vadd.f32 %v1801_v61, %v643_v14 }
 0x12d   : > { %1080 = vst [vmem:[%s1787_s23 + $0x20] sm:$0xf] %v1319_v10  ;;  %v1321_v19 = vpack.c.bf16 %v878_v12, %v878_v12 }
 0x12e   : > { %1083 = vst [vmem:[%s1787_s23 + $0x30] sm:$0xff] %v1322_v15  ;;  %1076 = vst [vmem:[%s1787_s23 + $0x8] sm:$0xf] %v1315_v16  ;;  %v1324_v22 = vpack.c.bf16 %v883_v17, %v882_v11  ;;  %v1317_v23 = vpack.c.bf16 %v872_v18, %v872_v18 }
 0x12f   : > { %1082 = vst [vmem:[%s1787_s23 + $0x2c] sm:$0xf] %v1321_v19 }
 0x130   : > { %1085 = vst [vmem:[%s1787_s23 + $0x3c] sm:$0xff] %v1324_v22  ;;  %1078 = vst [vmem:[%s1787_s23 + $0x14] sm:$0xf] %v1317_v23  ;;  %v557_v24 = vpop.f32.mrb[12].mxu0  ;;  %v1367_v25 = vpop.f32.mrb[12].mxu1 }
 0x131   : > { %v885_v26 = vadd.f32 %v1774_v20, %v557_v24  ;;  %v887_v27 = vadd.f32 %v1367_v25, %v1801_v61  ;;  %v559_v28 = vpop.f32.mrb[13].mxu0  ;;  %v656_v29 = vpop.f32.mrb[13].mxu1 }
 0x132   : > { %v886_v30 = vadd.f32 %v1776_v21, %v559_v28  ;;  %v881_v31 = vadd.f32 %v1801_v61, %v656_v29  ;;  %v561_v32 = vpop.f32.mrb[14].mxu0  ;;  %v1368_v33 = vpop.f32.mrb[14].mxu1 }
 0x133   : > { %v1327_v34 = vpack.c.bf16 %v887_v27, %v887_v27  ;;  %v888_v35 = vadd.f32 %v1774_v20, %v561_v32  ;;  %v890_v36 = vadd.f32 %v1368_v33, %v1801_v61  ;;  %v563_v37 = vpop.f32.mrb[15].mxu0  ;;  %v659_v38 = vpop.f32.mrb[15].mxu1 }
 0x134   : > { %v1326_v39 = vpack.c.bf16 %v886_v30, %v885_v26  ;;  %v1323_v40 = vpack.c.bf16 %v881_v31, %v881_v31  ;;  %v889_v41 = vadd.f32 %v1776_v21, %v563_v37  ;;  %v884_v42 = vadd.f32 %v1801_v61, %v659_v38 }
 0x135   : > { %1088 = vst [vmem:[%s1787_s23 + $0x50] sm:$0xf] %v1327_v34  ;;  %v1329_v43 = vpack.c.bf16 %v890_v36, %v890_v36 }
 0x136   : > { %1087 = vst [vmem:[%s1787_s23 + $0x48] sm:$0xff] %v1326_v39  ;;  %1084 = vst [vmem:[%s1787_s23 + $0x38] sm:$0xf] %v1323_v40  ;;  %v1328_v44 = vpack.c.bf16 %v889_v41, %v888_v35  ;;  %v1325_v45 = vpack.c.bf16 %v884_v42, %v884_v42 }
 0x137   : > { %1090 = vst [vmem:[%s1787_s23 + $0x5c] sm:$0xf] %v1329_v43 }
 0x138   : > { %1089 = vst [vmem:[%s1787_s23 + $0x54] sm:$0xff] %v1328_v44  ;;  %1086 = vst [vmem:[%s1787_s23 + $0x44] sm:$0xf] %v1325_v45  ;;  %v567_v46 = vpop.f32.mrb[16].mxu0  ;;  %v1371_v47 = vpop.f32.mrb[16].mxu1 }
 0x139   : > { %v891_v48 = vadd.f32 %v1774_v20, %v567_v46  ;;  %v899_v49 = vadd.f32 %v1371_v47, %v1801_v61  ;;  %v569_v50 = vpop.f32.mrb[17].mxu0  ;;  %v672_v51 = vpop.f32.mrb[17].mxu1 }
 0x13a   : > { %v892_v52 = vadd.f32 %v1776_v21, %v569_v50  ;;  %v893_v53 = vadd.f32 %v1801_v61, %v672_v51  ;;  %v571_v54 = vpop.f32.mrb[18].mxu0  ;;  %v1372_v55 = vpop.f32.mrb[18].mxu1 }
 0x13b   : > { %v1335_v56 = vpack.c.bf16 %v899_v49, %v899_v49  ;;  %v894_v57 = vadd.f32 %v1774_v20, %v571_v54  ;;  %v902_v58 = vadd.f32 %v1372_v55, %v1801_v61  ;;  %v573_v59 = vpop.f32.mrb[19].mxu0  ;;  %v675_v60 = vpop.f32.mrb[19].mxu1 }
 0x13c   : > { %v1330_v62 = vpack.c.bf16 %v892_v52, %v891_v48  ;;  %v1331_v63 = vpack.c.bf16 %v893_v53, %v893_v53  ;;  %v895_v0 = vadd.f32 %v1776_v21, %v573_v59  ;;  %v896_v1 = vadd.f32 %v1801_v61, %v675_v60 }
 0x13d   : > { %1096 = vst [vmem:[%s1787_s23 + $0x80] sm:$0xf] %v1335_v56  ;;  %v1337_v2 = vpack.c.bf16 %v902_v58, %v902_v58 }
 0x13e   : > { %1091 = vst [vmem:[%s1787_s23 + $0x60] sm:$0xff] %v1330_v62  ;;  %1092 = vst [vmem:[%s1787_s23 + $0x68] sm:$0xf] %v1331_v63  ;;  %v1332_v3 = vpack.c.bf16 %v895_v0, %v894_v57  ;;  %v1333_v4 = vpack.c.bf16 %v896_v1, %v896_v1 }
 0x13f   : > { %1098 = vst [vmem:[%s1787_s23 + $0x8c] sm:$0xf] %v1337_v2 }
 0x140   : > { %1093 = vst [vmem:[%s1787_s23 + $0x6c] sm:$0xff] %v1332_v3  ;;  %1094 = vst [vmem:[%s1787_s23 + $0x74] sm:$0xf] %v1333_v4  ;;  %v577_v5 = vpop.f32.mrb[20].mxu0  ;;  %v1375_v6 = vpop.f32.mrb[20].mxu1 }
 0x141   : > { %v897_v7 = vadd.f32 %v1774_v20, %v577_v5  ;;  %v911_v8 = vadd.f32 %v1375_v6, %v1801_v61  ;;  %v579_v9 = vpop.f32.mrb[21].mxu0  ;;  %v688_v10 = vpop.f32.mrb[21].mxu1 }
 0x142   : > { %v898_v11 = vadd.f32 %v1776_v21, %v579_v9  ;;  %v905_v12 = vadd.f32 %v1801_v61, %v688_v10  ;;  %v581_v13 = vpop.f32.mrb[22].mxu0  ;;  %v1376_v14 = vpop.f32.mrb[22].mxu1 }
 0x143   : > { %v1343_v15 = vpack.c.bf16 %v911_v8, %v911_v8  ;;  %v900_v16 = vadd.f32 %v1774_v20, %v581_v13  ;;  %v914_v17 = vadd.f32 %v1376_v14, %v1801_v61  ;;  %v583_v18 = vpop.f32.mrb[23].mxu0  ;;  %v691_v19 = vpop.f32.mrb[23].mxu1 }
 0x144   : > { %v1334_v22 = vpack.c.bf16 %v898_v11, %v897_v7  ;;  %v1339_v23 = vpack.c.bf16 %v905_v12, %v905_v12  ;;  %v901_v24 = vadd.f32 %v1776_v21, %v583_v18  ;;  %v908_v25 = vadd.f32 %v1801_v61, %v691_v19 }
 0x145   : > { %1104 = vst [vmem:[%s1787_s23 + $0xb0] sm:$0xf] %v1343_v15  ;;  %v1345_v20 = vpack.c.bf16 %v914_v17, %v914_v17 }
 0x146   : > { %1095 = vst [vmem:[%s1787_s23 + $0x78] sm:$0xff] %v1334_v22  ;;  %1100 = vst [vmem:[%s1787_s23 + $0x98] sm:$0xf] %v1339_v23  ;;  %v1336_v26 = vpack.c.bf16 %v901_v24, %v900_v16  ;;  %v1341_v27 = vpack.c.bf16 %v908_v25, %v908_v25 }
 0x147   : > { %1106 = vst [vmem:[%s1787_s23 + $0xbc] sm:$0xf] %v1345_v20 }
 0x148   : > { %1097 = vst [vmem:[%s1787_s23 + $0x84] sm:$0xff] %v1336_v26  ;;  %1102 = vst [vmem:[%s1787_s23 + $0xa4] sm:$0xf] %v1341_v27 }
 0x149   : > { %1512 = shalt.err (!%p1509_p5)
}
 0x14a   : > { %s1513_s22 = scalar_lea.hbm %s1862_s5, 3072  ;;  %s1517_s24 = scalar_lea.hbm %s1922_s3, 6144 }
 0x14b   : > { %p1514_p6 = scmp.ne.s32.totalorder %s1862_s5, %s1513_s22  ;;  %p1518_p2 = scmp.lt.u32.totalorder %s1862_s5, %s1922_s3 }
 0x14c   : > { %p1519_p4 = scmp.lt.u32.totalorder %s1517_s24, %s1513_s22  ;;  %p1521_p9 = scmp.lt.u32.totalorder %s1513_s22, %s1862_s5 }
 0x14d   : > { %p1515_p7 = pnand %p1514_p6, %p1929_p11 }
 0x14e   : > { %p1520_p8 = por %p1519_p4, %p1518_p2 }
 0x14f   : > { %p1516_p12 = pneg %p1515_p7 }
 0x150   : > { %p1522_p0 = por %p1521_p9, %p1520_p8 }
 0x152   : > { %p1523_p10 = pnand %p1522_p0, %p1516_p12 }
 0x154   : > { %1526 = shalt.err (!%p1523_p10)
}
 0x155   : > { %s1589_s23 = smov 192   ;;  %s1590_s28 = smov 384  }
 0x156   : > { %s1591_s15 = smov 12  }
 0x157   : > { %1386 = dma.vmem_to_hbm [thread:$0]  (%p1929_p11), %s1865_s29, 3072, %s1862_s5, %s1108_s6, %s1589_s23, %s1590_s28, %s1591_s15  }
 0x158 PF: > { %s1139_s30 = sand.u32 1, %s1561_s12   ;;  %p1930_p13 = scmp.ne.s32.totalorder %s1927_s27, 0 }
 0x159   : > { %p1931_p1 = scmp.ge.s32.totalorder %s1581_s17, 2  ;;  %s1140_s8 = scalar_lea.sflag [#allocation5], %s1139_s30 }
 0x15b   : > { %p1393_p3 = pnand %p1931_p1, %p1930_p13 }
 0x15d   : > { %1556 = dma.done.wait (!%p1393_p3), %s1140_s8, 3072  }
 0x15e   : > { %1558 = vsyncadd (!%p1393_p3), %s1140_s8, 4294964224  ;;  %s19_s17 = sadd.s32 1, %s1581_s17   ;;  %s1932_s12 = smov %s1565_s13 }
 0x15f   : > { %p16_p5 = scmp.ge.s32.totalorder %s19_s17, 4   ;;  %s1933_s13 = smov %s1569_s14 }
 0x160   : > { %s1934_s14 = smov %s1668_s26  ;;  %s1935_s15 = smov %s1577_s16 }
 0x161   : > { %s1936_s16 = smov %s1938_s20  ;;  %18 = sbr.rel (!%p16_p5) target bundleno = 6 (0x6), region = 91 }
 0x168   :  { %1145 = vsyncpa [#allocation4], 1 }
 0x169   :  { %1147 = vsyncpa [#allocation4 + $0x1], 1 }
 0x16a   :  { %1148 = vsyncpa [#allocation5], 1 }
 0x16b   :  { %1150 = vsyncpa [#allocation5 + $0x1], 1 }

</bundles_post_ra>
